<compile_context>
chip_gen: v7x
topology: tpu7x:2x2x1
jax: 0.10.0
libtpu: 0.0.40
codegen_flags: <defaults>
</compile_context>

<pallas_src>
import jax
import jax.numpy as jnp
from jax.experimental import pallas as pl
from jax.experimental.pallas import tpu as pltpu


LANE = 128   # TPU lane width: feature dims are padded to a multiple of this
SUB = 16     # bf16 sublane tile: batch rows are padded to a multiple of this


def rnn_kernel(xh_ref, w_ref, wo_ref, bo_ref, out_ref, hid_ref):
    # xh = [x | h | 1 | 0...] (bf16), w = [Wi; Wh; bi+bh; 0...] (bf16).
    xh = xh_ref[...]                                        # (Np, C_p)

    # hidden = tanh(i2h(x) + h2h(h) + bi + bh) as a single MXU pass, f32 accum.
    pre = jnp.dot(xh, w_ref[...], preferred_element_type=jnp.float32)
    hid = jnp.tanh(pre)                                     # (Np, H_p) f32; pad lanes -> 0

    # output = log_softmax(h2o(hidden), dim=1)
    # (padded bo lanes are -1e30 -> exp underflows to 0, never the max)
    logits = (jnp.dot(hid.astype(wo_ref.dtype), wo_ref[...],
                      preferred_element_type=jnp.float32)
              + bo_ref[...])                                # (Np, Dout_p) f32
    m = jnp.max(logits, axis=1, keepdims=True)
    shifted = logits - m
    lse = jnp.log(jnp.sum(jnp.exp(shifted), axis=1, keepdims=True))

    out_ref[...] = shifted - lse                            # log-probabilities
    hid_ref[...] = hid                                      # new hidden state


def _round_up(n, m):
    return ((n + m - 1) // m) * m


def _pad2d(a, rows, cols, fill=0.0):
    return jnp.pad(a, ((0, rows - a.shape[0]), (0, cols - a.shape[1])),
                   constant_values=fill)


def prepare_params(wi_t, bi, wh_t, bh, wo_t, bo):
    """One-time weight prep (hoisted out of the per-step path).

    wi_t: (d_in, H), wh_t: (H, H), wo_t: (H, d_out)  -- already (in, out) layout.
    bi, bh: (1, H); bo: (1, d_out).
    Returns padded/merged bf16 weights + shape metadata.
    """
    d_in, H = wi_t.shape
    d_out = wo_t.shape[1]

    c = d_in + H + 1                       # [x | h | ones] contraction width
    c_p = _round_up(c, LANE)
    h_p = _round_up(H, LANE)
    dout_p = _round_up(d_out, LANE)

    # Stacked pre-activation weight: rows = [Wi; Wh; (bi+bh)], zero-padded.
    w_merged = jnp.concatenate([wi_t, wh_t, (bi + bh).reshape(1, H)], axis=0)
    w_p = _pad2d(w_merged.astype(jnp.bfloat16), c_p, h_p)
    wo_p = _pad2d(wo_t.astype(jnp.bfloat16), h_p, dout_p)
    bo_p = _pad2d(bo.reshape(1, d_out).astype(jnp.float32), 1, dout_p, fill=-1e30)

    meta = dict(d_in=d_in, H=H, d_out=d_out, c_p=c_p, h_p=h_p, dout_p=dout_p)
    return (w_p, wo_p, bo_p), meta


def rnn_forward(x, h, params, meta):
    """Single recurrence step. x: (N, d_in) f32; h: (1, H) or (N, H) f32."""
    w_p, wo_p, bo_p = params
    N = x.shape[0]
    H, d_out = meta["H"], meta["d_out"]
    c_p, h_p, dout_p = meta["c_p"], meta["h_p"], meta["dout_p"]

    n_pad = _round_up(N, SUB)

    # Broadcast hidden over batch (PyTorch broadcast of the (1,H) h2h row), append
    # the ones lane that carries the folded bias, pad lanes/rows, cast to bf16.
    h_full = jnp.broadcast_to(h, (N, H))
    ones = jnp.ones((N, 1), jnp.float32)
    xh = jnp.concatenate([x, h_full, ones], axis=1).astype(jnp.bfloat16)
    xh_p = _pad2d(xh, n_pad, c_p)

    out_p, hid_p = pl.pallas_call(
        rnn_kernel,
        out_shape=(jax.ShapeDtypeStruct((n_pad, dout_p), jnp.float32),
                   jax.ShapeDtypeStruct((n_pad, h_p), jnp.float32)),
        grid=(1,),                                   # single tile: launch-bound problem
        in_specs=[
            pl.BlockSpec((n_pad, c_p), lambda i: (0, 0)),    # [x | h | 1]
            pl.BlockSpec((c_p, h_p), lambda i: (0, 0)),      # [Wi; Wh; bi+bh]
            pl.BlockSpec((h_p, dout_p), lambda i: (0, 0)),   # Wo^T
            pl.BlockSpec((1, dout_p), lambda i: (0, 0)),     # bo (pad lanes = -1e30)
        ],
        out_specs=[pl.BlockSpec((n_pad, dout_p), lambda i: (0, 0)),
                   pl.BlockSpec((n_pad, h_p), lambda i: (0, 0))],
        compiler_params=pltpu.CompilerParams(
            dimension_semantics=("arbitrary",)),
    )(xh_p, w_p, wo_p, bo_p)

    return out_p[:N, :d_out], hid_p[:N, :H]


def init_params(key, input_size, hidden_size, output_size):
    """Deterministic synthetic init mimicking nn.Linear's U(-1/sqrt(fan_in), +)."""
    ks = jax.random.split(key, 6)

    def linear(kw, kb, fan_in, fan_out):
        bound = 1.0 / jnp.sqrt(fan_in)
        w = jax.random.uniform(kw, (fan_in, fan_out), jnp.float32, -bound, bound)
        b = jax.random.uniform(kb, (1, fan_out), jnp.float32, -bound, bound)
        return w, b

    wi_t, bi = linear(ks[0], ks[1], input_size, hidden_size)
    wh_t, bh = linear(ks[2], ks[3], hidden_size, hidden_size)
    wo_t, bo = linear(ks[4], ks[5], hidden_size, output_size)
    return wi_t, bi, wh_t, bh, wo_t, bo


if __name__ == "__main__":
    # Shapes consistent with the module's usage:
    #   input  : (n_samples, input_size)   (n_samples = 100 in the spec)
    #   hidden : (1, hidden_size)          (from initHidden())
    n_samples, input_size, hidden_size, output_size = 100, 16, 32, 8

    key = jax.random.PRNGKey(0)
    k_x, k_p = jax.random.split(key)

    x = jax.random.normal(k_x, (n_samples, input_size), dtype=jnp.float32)
    h0 = jnp.zeros((1, hidden_size), dtype=jnp.float32)      # rnn.initHidden()

    wi_t, bi, wh_t, bh, wo_t, bo = init_params(
        k_p, input_size, hidden_size, output_size)

    params, meta = prepare_params(wi_t, bi, wh_t, bh, wo_t, bo)  # one-time prep
    output, hidden = rnn_forward(x, h0, params, meta)
    jax.block_until_ready((output, hidden))

    assert output.shape == (n_samples, output_size)
    assert hidden.shape == (n_samples, hidden_size)

    # Reference 1: same math (bf16 operands incl. folded bias, f32 accumulation).
    bf = jnp.bfloat16
    h_full = jnp.broadcast_to(h0, (n_samples, hidden_size))
    ones = jnp.ones((n_samples, 1), jnp.float32)
    xh_ref = jnp.concatenate([x, h_full, ones], axis=1).astype(bf)
    w_ref = jnp.concatenate(
        [wi_t, wh_t, (bi + bh).reshape(1, hidden_size)], axis=0).astype(bf)
    pre_ref = jnp.dot(xh_ref, w_ref, preferred_element_type=jnp.float32)
    hid_ref = jnp.tanh(pre_ref)
    logits_ref = (jnp.dot(hid_ref.astype(bf), wo_t.astype(bf),
                          preferred_element_type=jnp.float32) + bo)
    out_ref = jax.nn.log_softmax(logits_ref, axis=1)
    assert jnp.allclose(output, out_ref, atol=1e-3), "log-softmax mismatch (bf16 ref)"
    assert jnp.allclose(hidden, hid_ref, atol=1e-3), "hidden mismatch (bf16 ref)"

    # Reference 2: pure f32 semantics of the PyTorch module -> loose tolerance.
    pre_f32 = x @ wi_t + bi + h0 @ wh_t + bh
    hid_f32 = jnp.tanh(pre_f32)
    out_f32 = jax.nn.log_softmax(hid_f32 @ wo_t + bo, axis=1)
    assert jnp.allclose(output, out_f32, atol=5e-2), "semantic drift vs f32 reference"
    assert jnp.allclose(hidden, hid_f32, atol=5e-2), "semantic drift vs f32 reference"

    print("KERNEL_OK")
</pallas_src>

<mosaic_0001>
module attributes {stable_mosaic.version = 11 : i64} {
  func.func @rnn_kernel(%arg0: i32, %arg1: memref<112x128xbf16, #tpu.memory_space<vmem>>, %arg2: memref<128x128xbf16, #tpu.memory_space<vmem>>, %arg3: memref<128x128xbf16, #tpu.memory_space<vmem>>, %arg4: memref<1x128xf32, #tpu.memory_space<vmem>>, %arg5: memref<112x128xf32, #tpu.memory_space<vmem>>, %arg6: memref<112x128xf32, #tpu.memory_space<vmem>>) attributes {dimension_semantics = [#tpu.dimension_semantics<arbitrary>], iteration_bounds = array<i64: 1>, scalar_prefetch = 0 : i64, scratch_operands = 0 : i64, tpu.core_type = #tpu.core_type<tc>, window_params = [{pipeline_mode = #tpu.pipeline_mode<synchronous>, transform_indices = @transform_0, window_bounds = array<i64: 112, 128>}, {pipeline_mode = #tpu.pipeline_mode<synchronous>, transform_indices = @transform_1, window_bounds = array<i64: 128, 128>}, {pipeline_mode = #tpu.pipeline_mode<synchronous>, transform_indices = @transform_2, window_bounds = array<i64: 128, 128>}, {pipeline_mode = #tpu.pipeline_mode<synchronous>, transform_indices = @transform_3, window_bounds = array<i64: 1, 128>}, {pipeline_mode = #tpu.pipeline_mode<synchronous>, transform_indices = @transform_4, window_bounds = array<i64: 112, 128>}, {pipeline_mode = #tpu.pipeline_mode<synchronous>, transform_indices = @transform_5, window_bounds = array<i64: 112, 128>}]} {
    %c0 = arith.constant 0 : index
    %c0_0 = arith.constant 0 : index
    %0 = vector.load %arg1[%c0, %c0_0] : memref<112x128xbf16, #tpu.memory_space<vmem>>, vector<112x128xbf16>
    %c0_1 = arith.constant 0 : index
    %c0_2 = arith.constant 0 : index
    %1 = vector.load %arg2[%c0_1, %c0_2] : memref<128x128xbf16, #tpu.memory_space<vmem>>, vector<128x128xbf16>
    %cst = arith.constant dense<0.000000e+00> : vector<112x128xf32>
    %2 = tpu.matmul %0, %1, %cst {dimension_numbers = #tpu.dot_dimension_numbers<[1], [0], [0], [1], [0, 0, 1, 1], [], []>} : vector<112x128xbf16>, vector<128x128xbf16>, vector<112x128xf32> -> vector<112x128xf32>
    %3 = math.tanh %2 : vector<112x128xf32>
    %4 = arith.truncf %3 : vector<112x128xf32> to vector<112x128xbf16>
    %c0_3 = arith.constant 0 : index
    %c0_4 = arith.constant 0 : index
    %5 = vector.load %arg3[%c0_3, %c0_4] : memref<128x128xbf16, #tpu.memory_space<vmem>>, vector<128x128xbf16>
    %cst_5 = arith.constant dense<0.000000e+00> : vector<112x128xf32>
    %6 = tpu.matmul %4, %5, %cst_5 {dimension_numbers = #tpu.dot_dimension_numbers<[1], [0], [0], [1], [0, 0, 1, 1], [], []>} : vector<112x128xbf16>, vector<128x128xbf16>, vector<112x128xf32> -> vector<112x128xf32>
    %c0_6 = arith.constant 0 : index
    %c0_7 = arith.constant 0 : index
    %7 = vector.load %arg4[%c0_6, %c0_7] : memref<1x128xf32, #tpu.memory_space<vmem>>, vector<1x128xf32>
    %8 = vector.broadcast %7 : vector<1x128xf32> to vector<112x128xf32>
    %9 = arith.addf %6, %8 : vector<112x128xf32>
    %cst_8 = arith.constant dense<0xFF800000> : vector<112xf32>
    %10 = vector.multi_reduction <maximumf>, %9, %cst_8 [1] : vector<112x128xf32> to vector<112xf32>
    %11 = vector.shape_cast %10 : vector<112xf32> to vector<112x1xf32>
    %12 = vector.broadcast %11 : vector<112x1xf32> to vector<112x128xf32>
    %13 = arith.subf %9, %12 : vector<112x128xf32>
    %14 = math.exp %13 : vector<112x128xf32>
    %cst_9 = arith.constant dense<0.000000e+00> : vector<112xf32>
    %15 = vector.multi_reduction <add>, %14, %cst_9 [1] : vector<112x128xf32> to vector<112xf32>
    %16 = vector.shape_cast %15 : vector<112xf32> to vector<112x1xf32>
    %17 = math.log %16 : vector<112x1xf32>
    %18 = vector.broadcast %17 : vector<112x1xf32> to vector<112x128xf32>
    %19 = arith.subf %13, %18 : vector<112x128xf32>
    %c0_10 = arith.constant 0 : index
    %c0_11 = arith.constant 0 : index
    %20 = vector.load %arg5[%c0_10, %c0_11] : memref<112x128xf32, #tpu.memory_space<vmem>>, vector<112x128xf32>
    tpu.vector_store %arg5[%c0_10, %c0_11], %19 {strides = array<i32>} : memref<112x128xf32, #tpu.memory_space<vmem>>, vector<112x128xf32>,
    %c0_12 = arith.constant 0 : index
    %c0_13 = arith.constant 0 : index
    %21 = vector.load %arg6[%c0_12, %c0_13] : memref<112x128xf32, #tpu.memory_space<vmem>>, vector<112x128xf32>
    tpu.vector_store %arg6[%c0_12, %c0_13], %3 {strides = array<i32>} : memref<112x128xf32, #tpu.memory_space<vmem>>, vector<112x128xf32>,
    return
  }
  func.func @transform_0(%arg0: i32) -> (i32, i32) {
    %c0_i32 = arith.constant 0 : i32
    %c0_i32_0 = arith.constant 0 : i32
    %c0_i32_1 = arith.constant 0 : i32
    return %c0_i32, %c0_i32_0 : i32, i32
  }
  func.func @transform_1(%arg0: i32) -> (i32, i32) {
    %c0_i32 = arith.constant 0 : i32
    %c0_i32_0 = arith.constant 0 : i32
    %c0_i32_1 = arith.constant 0 : i32
    return %c0_i32, %c0_i32_0 : i32, i32
  }
  func.func @transform_2(%arg0: i32) -> (i32, i32) {
    %c0_i32 = arith.constant 0 : i32
    %c0_i32_0 = arith.constant 0 : i32
    %c0_i32_1 = arith.constant 0 : i32
    return %c0_i32, %c0_i32_0 : i32, i32
  }
  func.func @transform_3(%arg0: i32) -> (i32, i32) {
    %c0_i32 = arith.constant 0 : i32
    %c0_i32_0 = arith.constant 0 : i32
    %c0_i32_1 = arith.constant 0 : i32
    return %c0_i32, %c0_i32_0 : i32, i32
  }
  func.func @transform_4(%arg0: i32) -> (i32, i32) {
    %c0_i32 = arith.constant 0 : i32
    %c0_i32_0 = arith.constant 0 : i32
    %c0_i32_1 = arith.constant 0 : i32
    return %c0_i32, %c0_i32_0 : i32, i32
  }
  func.func @transform_5(%arg0: i32) -> (i32, i32) {
    %c0_i32 = arith.constant 0 : i32
    %c0_i32_0 = arith.constant 0 : i32
    %c0_i32_1 = arith.constant 0 : i32
    return %c0_i32, %c0_i32_0 : i32, i32
  }
}

</mosaic_0001>

<bundles_post_ra>
// kernel: tpu_custom_call.1
= control target key start
LH: loop header
LB: loop body
LE: loop exit
PB: predicated region body
PF: predicated region fallthrough
CT: control target
= control target key end

     0   :  { %11 = vsyncpa [#allocation3], 0  ;;  %s1287_s0 = inlined_call_operand.hbm [shape: bf16[112,128], index: 0, kind: input, shape index: {}]   ;;  %s1288_s1 = inlined_call_operand.hbm [shape: bf16[128,128], index: 1, kind: input, shape index: {}]   ;;  %s1289_s2 = inlined_call_operand.hbm [shape: bf16[128,128], index: 2, kind: input, shape index: {}]   ;;  %s1290_s3 = inlined_call_operand.vmem [shape: f32[1,128], index: 3, kind: input, shape index: {}]   ;;  %s1291_s4 = inlined_call_operand.hbm [shape: f32[112,128], index: 4, kind: output, shape index: {0}]   ;;  %s1292_s5 = inlined_call_operand.hbm [shape: f32[112,128], index: 5, kind: output, shape index: {1}]  }
   0x1   :  { %12 = vsyncpa [#allocation6], 0 }
   0x2   :  { %13 = vsyncpa [#allocation4], 0 }
   0x3   :  { %14 = vsyncpa [#allocation10], 0  ;;  %s1033_s18 = smov [#allocation5]   ;;  %s1034_s20 = smov [#allocation2]  }
   0x4   :  { %s32_s19 = sshll.u32 %s1033_s18, 4  ;;  %s20_s21 = sshll.u32 %s1034_s20, 4  ;;  %s33_s19 = int_to_ptr.vmem [resolvable:$true] %s32_s19  ;;  %s1074_s21 = int_to_ptr.vmem [resolvable:$true] %s20_s21 }
   0x5   :  { %s915_s24 = scalar_lea.hbm %s1288_s1, 1024 }
   0x6   :  { %p916_p0 = scmp.ne.s32.totalorder %s1288_s1, %s915_s24  ;;  %p919_p1 = scmp.lt.u32.totalorder %s915_s24, %s1288_s1 }
   0x8   :  { %p921_p2 = pnand %p919_p1, %p916_p0 }
   0xa   :  { %924 = shalt.err (!%p921_p2)
}
   0xb   :  { %s925_s29 = scalar_lea.vmem %s33_s19, 1024  ;;  %p930_p4 = scmp.lt.s32.totalorder %s33_s19, %s33_s19 }
   0xc   :  { %p926_p3 = scmp.ne.s32.totalorder %s33_s19, %s925_s29  ;;  %p931_p5 = scmp.lt.s32.totalorder %s925_s29, %s925_s29 }
   0xe   :  { %p932_p6 = por %p931_p5, %p930_p4 }
  0x10   :  { %p933_p7 = pnand %p932_p6, %p926_p3 }
  0x12   :  { %936 = shalt.err (!%p933_p7)
}
  0x13   :  { %s1035_s30 = smov 64   ;;  %s1036_s6 = smov 4  }
  0x14   :  { %38 = dma.hbm_to_vmem [thread:$0]  %s1288_s1, 1024, %s33_s19, [#allocation6], %s1035_s30, %s1035_s30, %s1036_s6  }
  0x15   :  { %s937_s11 = scalar_lea.hbm %s1287_s0, 896 }
  0x16   :  { %p938_p8 = scmp.ne.s32.totalorder %s1287_s0, %s937_s11  ;;  %p941_p9 = scmp.lt.u32.totalorder %s937_s11, %s1287_s0 }
  0x18   :  { %p943_p10 = pnand %p941_p9, %p938_p8 }
  0x1a   :  { %946 = shalt.err (!%p943_p10)
}
  0x1b   :  { %s947_s16 = scalar_lea.vmem %s1074_s21, 896  ;;  %p952_p12 = scmp.lt.s32.totalorder %s1074_s21, %s1074_s21 }
  0x1c   :  { %p948_p11 = scmp.ne.s32.totalorder %s1074_s21, %s947_s16  ;;  %p953_p13 = scmp.lt.s32.totalorder %s947_s16, %s947_s16 }
  0x1e   :  { %p954_p0 = por %p953_p13, %p952_p12 }
  0x20   :  { %p955_p1 = pnand %p954_p0, %p948_p11 }
  0x22   :  { %958 = shalt.err (!%p955_p1)
}
  0x23   :  { %26 = dma.hbm_to_vmem [thread:$0]  %s1287_s0, 896, %s1074_s21, [#allocation3], %s1035_s30, %s1035_s30, %s1036_s6  }
  0x24   :  { %s1037_s18 = smov [#allocation7]   ;;  %s959_s23 = scalar_lea.hbm %s1289_s2, 1024 }
  0x25   :  { %s44_s19 = sshll.u32 %s1037_s18, 4  ;;  %p960_p2 = scmp.ne.s32.totalorder %s1289_s2, %s959_s23  ;;  %s45_s19 = int_to_ptr.vmem [resolvable:$true] %s44_s19 }
  0x26   :  { %p963_p3 = scmp.lt.u32.totalorder %s959_s23, %s1289_s2 }
  0x28   :  { %p965_p4 = pnand %p963_p3, %p960_p2 }
  0x2a   :  { %968 = shalt.err (!%p965_p4)
}
  0x2b   :  { %s969_s28 = scalar_lea.vmem %s45_s19, 1024  ;;  %p974_p6 = scmp.lt.s32.totalorder %s45_s19, %s45_s19 }
  0x2c   :  { %p970_p5 = scmp.ne.s32.totalorder %s45_s19, %s969_s28  ;;  %p975_p7 = scmp.lt.s32.totalorder %s969_s28, %s969_s28 }
  0x2e   :  { %p976_p8 = por %p975_p7, %p974_p6 }
  0x30   :  { %p977_p9 = pnand %p976_p8, %p970_p5 }
  0x32   :  { %980 = shalt.err (!%p977_p9)
}
  0x33   :  { %50 = dma.hbm_to_vmem [thread:$0]  %s1289_s2, 1024, %s45_s19, [#allocation6], %s1035_s30, %s1035_s30, %s1036_s6  }
  0x34   :  { %1025 = dma.done.wait [#allocation3], 896  }
  0x35   :  { %1026 = vsyncadd [#allocation3], 4294966400 }
  0x36   :  { %1027 = dma.done.wait [#allocation6], 2048  }
  0x37   :  { %1028 = vsyncadd [#allocation6], 4294965248  ;;  %v1038_v0 = vmov 0.0   ;;  %vm1039_vm0 = vmmov 0   ;;  %v808_v1 = vld [vmem:[#allocation5] sm:$0xff]   ;;  %v809_v2 = vld [vmem:[#allocation5 + $0x8] sm:$0xff]  }
  0x38   :  { %709 = vmatprep.subr.bf16.mxu0 %v1038_v0  ;;  %725 = vmatprep.mubr.msk.bf16.mxu0 %vm1039_vm0, %v1038_v0  ;;  %v810_v3 = vld [vmem:[#allocation5 + $0x10] sm:$0xff]   ;;  %v811_v4 = vld [vmem:[#allocation5 + $0x18] sm:$0xff]   ;;  %v812_v5 = vld [vmem:[#allocation5 + $0x20] sm:$0xff]  }
  0x39   :  { %753 = vmatprep.subr.bf16.mxu1 %v1038_v0  ;;  %769 = vmatprep.mubr.msk.bf16.mxu1 %vm1039_vm0, %v1038_v0  ;;  %v823_v6 = vld [vmem:[#allocation7] sm:$0xff]   ;;  %v824_v7 = vld [vmem:[#allocation7 + $0x8] sm:$0xff]   ;;  %v825_v9 = vld [vmem:[#allocation7 + $0x10] sm:$0xff]  }
  0x3a   :  { %710 = vmatpush3.bf16.msra.mxu0 %v808_v1  ;;  %754 = vmatpush3.bf16.msra.mxu1 %v823_v6  ;;  %v813_v8 = vld [vmem:[#allocation5 + $0x28] sm:$0xff]   ;;  %v814_v10 = vld [vmem:[#allocation5 + $0x30] sm:$0xff]   ;;  %v826_v11 = vld [vmem:[#allocation7 + $0x18] sm:$0xff]  }
  0x3b   :  { %711 = vmatprep.subr.bf16.mxu0 %v1038_v0  ;;  %755 = vmatprep.subr.bf16.mxu1 %v1038_v0  ;;  %v815_v12 = vld [vmem:[#allocation5 + $0x38] sm:$0xff]   ;;  %v816_v13 = vld [vmem:[#allocation2] sm:$0xff]   ;;  %v817_v14 = vld [vmem:[#allocation2 + $0x8] sm:$0xff]  }
  0x3c   :  { %v818_v15 = vld [vmem:[#allocation2 + $0x10] sm:$0xff]   ;;  %v819_v16 = vld [vmem:[#allocation2 + $0x18] sm:$0xff]   ;;  %v820_v17 = vld [vmem:[#allocation2 + $0x20] sm:$0xff]  }
  0x3d   :  { %v821_v18 = vld [vmem:[#allocation2 + $0x28] sm:$0xff]   ;;  %v822_v19 = vld [vmem:[#allocation2 + $0x30] sm:$0xff]   ;;  %v827_v20 = vld [vmem:[#allocation7 + $0x20] sm:$0xff]  }
  0x3e   :  { %712 = vmatpush3.bf16.msra.mxu0 %v809_v2  ;;  %756 = vmatpush3.bf16.msra.mxu1 %v824_v7  ;;  %v828_v21 = vld [vmem:[#allocation7 + $0x28] sm:$0xff]   ;;  %v829_v22 = vld [vmem:[#allocation7 + $0x30] sm:$0xff]   ;;  %v830_v23 = vld [vmem:[#allocation7 + $0x38] sm:$0xff]  }
  0x3f   :  { %713 = vmatprep.subr.bf16.mxu0 %v1038_v0  ;;  %757 = vmatprep.subr.bf16.mxu1 %v1038_v0 }
  0x42   :  { %714 = vmatpush3.bf16.msra.mxu0 %v810_v3  ;;  %758 = vmatpush3.bf16.msra.mxu1 %v825_v9 }
  0x43   :  { %715 = vmatprep.subr.bf16.mxu0 %v1038_v0  ;;  %759 = vmatprep.subr.bf16.mxu1 %v1038_v0 }
  0x46   :  { %716 = vmatpush3.bf16.msra.mxu0 %v811_v4  ;;  %760 = vmatpush3.bf16.msra.mxu1 %v826_v11 }
  0x47   :  { %717 = vmatprep.subr.bf16.mxu0 %v1038_v0  ;;  %761 = vmatprep.subr.bf16.mxu1 %v1038_v0 }
  0x4a   :  { %718 = vmatpush3.bf16.msra.mxu0 %v812_v5  ;;  %762 = vmatpush3.bf16.msra.mxu1 %v827_v20 }
  0x4b   :  { %719 = vmatprep.subr.bf16.mxu0 %v1038_v0  ;;  %763 = vmatprep.subr.bf16.mxu1 %v1038_v0 }
  0x4e   :  { %720 = vmatpush3.bf16.msra.mxu0 %v813_v8  ;;  %764 = vmatpush3.bf16.msra.mxu1 %v828_v21 }
  0x4f   :  { %721 = vmatprep.subr.bf16.mxu0 %v1038_v0  ;;  %765 = vmatprep.subr.bf16.mxu1 %v1038_v0 }
  0x52   :  { %722 = vmatpush3.bf16.msra.mxu0 %v814_v10  ;;  %766 = vmatpush3.bf16.msra.mxu1 %v829_v22  ;;  %v670_v10 = vld [vmem:[%s1290_s3] ss:$0 sm:$0xff]  ;;  %s1040_s3 = smov [#allocation9]  }
  0x53   :  { %723 = vmatprep.subr.bf16.mxu0 %v1038_v0  ;;  %767 = vmatprep.subr.bf16.mxu1 %v1038_v0  ;;  %s638_s30 = sshll.u32 %s1040_s3, 4  ;;  %s639_s30 = int_to_ptr.vmem [resolvable:$true] %s638_s30 }
  0x54   :  { %s981_s6 = scalar_lea.vmem %s639_s30, 1792  ;;  %p986_p11 = scmp.lt.s32.totalorder %s639_s30, %s639_s30 }
  0x55   :  { %p982_p10 = scmp.ne.s32.totalorder %s639_s30, %s981_s6  ;;  %p987_p12 = scmp.lt.s32.totalorder %s981_s6, %s981_s6 }
  0x56   :  { %724 = vmatpush3.bf16.msra.mxu0 %v815_v12  ;;  %768 = vmatpush3.bf16.msra.mxu1 %v830_v23 }
  0x57   :  { %p988_p13 = por %p987_p12, %p986_p11 }
  0x59   :  { %726 = vmatmul.mubr.bf16.vlgmr.msra.gmra.mrb[0].mxu0 %v816_v13  ;;  %p989_p0 = pnand %p988_p13, %p982_p10 }
  0x5a   :  { %729 = vmatprep.mubr.msk.bf16.mxu0 %vm1039_vm0, %v1038_v0 }
  0x61   :  { %730 = vmatmul.mubr.bf16.gmra.mrb[4].mxu0 %v817_v14 }
  0x62   :  { %733 = vmatprep.mubr.msk.bf16.mxu0 %vm1039_vm0, %v1038_v0 }
  0x69   :  { %734 = vmatmul.mubr.bf16.gmra.mrb[8].mxu0 %v818_v15 }
  0x6a   :  { %737 = vmatprep.mubr.msk.bf16.mxu0 %vm1039_vm0, %v1038_v0 }
  0x71   :  { %738 = vmatmul.mubr.bf16.gmra.mrb[12].mxu0 %v819_v16 }
  0x72   :  { %741 = vmatprep.mubr.msk.bf16.mxu0 %vm1039_vm0, %v1038_v0 }
  0x79   :  { %742 = vmatmul.mubr.bf16.gmra.mrb[16].mxu0 %v820_v17 }
  0x7a   :  { %745 = vmatprep.mubr.msk.bf16.mxu0 %vm1039_vm0, %v1038_v0 }
  0x81   :  { %746 = vmatmul.mubr.bf16.gmra.mrb[20].mxu0 %v821_v18 }
  0x82   :  { %749 = vmatprep.mubr.msk.bf16.mxu0 %vm1039_vm0, %v1038_v0 }
  0x89   :  { %750 = vmatmul.mubr.bf16.gmra.mrb[24].mxu0 %v822_v19 }
 0x12c   :  { %v217_v24 = vpop.f32.mrb[0].mxu0 }
 0x12d   :  { %831 = vtanh.f32 %v217_v24  ;;  %v727_v25 = vpop.f32.mrb[1].mxu0 }
 0x12e   :  { %v220_v26 = vpop.f32.mrb[2].mxu0 }
 0x12f   :  { %833 = vtanh.f32 %v220_v26  ;;  %v728_v27 = vpop.f32.mrb[3].mxu0 }
 0x134   :  { %v225_v28 = vpop.f32.mrb[4].mxu0 }
 0x135   :  { %835 = vtanh.f32 %v225_v28  ;;  %v731_v29 = vpop.f32.mrb[5].mxu0 }
 0x136   :  { %v228_v30 = vpop.f32.mrb[6].mxu0 }
 0x137   :  { %v832_v31 = vpop.eup %831  ;;  %837 = vtanh.f32 %v228_v30  ;;  %v732_v32 = vpop.f32.mrb[7].mxu0 }
 0x138   :  { %607 = vst [vmem:[#allocation9] sm:$0xff] %v832_v31 }
 0x139   :  { %v834_v33 = vpop.eup %833 }
 0x13a   :  { %608 = vst [vmem:[#allocation9 + $0x8] sm:$0xff] %v834_v33  ;;  %v286_v34 = vpack.c.bf16 %v834_v33, %v832_v31 }
 0x13c   :  { %v233_v35 = vpop.f32.mrb[8].mxu0  ;;  %770 = vmatmul.mubr.bf16.vlgmr.msra.gmra.mrb[0].mxu1 %v286_v34 }
 0x13d   :  { %839 = vtanh.f32 %v233_v35  ;;  %v735_v36 = vpop.f32.mrb[9].mxu0  ;;  %773 = vmatprep.mubr.msk.bf16.mxu1 %vm1039_vm0, %v1038_v0 }
 0x13e   :  { %v236_v37 = vpop.f32.mrb[10].mxu0 }
 0x13f   :  { %v836_v38 = vpop.eup %835  ;;  %841 = vtanh.f32 %v236_v37  ;;  %v736_v39 = vpop.f32.mrb[11].mxu0 }
 0x140   :  { %609 = vst [vmem:[#allocation9 + $0x10] sm:$0xff] %v836_v38 }
 0x141   :  { %v838_v40 = vpop.eup %837 }
 0x142   :  { %610 = vst [vmem:[#allocation9 + $0x18] sm:$0xff] %v838_v40  ;;  %v287_v41 = vpack.c.bf16 %v838_v40, %v836_v38 }
 0x144   :  { %v241_v42 = vpop.f32.mrb[12].mxu0  ;;  %774 = vmatmul.mubr.bf16.gmra.mrb[4].mxu1 %v287_v41 }
 0x145   :  { %843 = vtanh.f32 %v241_v42  ;;  %v739_v43 = vpop.f32.mrb[13].mxu0  ;;  %777 = vmatprep.mubr.msk.bf16.mxu1 %vm1039_vm0, %v1038_v0 }
 0x146   :  { %v244_v44 = vpop.f32.mrb[14].mxu0 }
 0x147   :  { %v840_v45 = vpop.eup %839  ;;  %845 = vtanh.f32 %v244_v44  ;;  %v740_v46 = vpop.f32.mrb[15].mxu0 }
 0x148   :  { %611 = vst [vmem:[#allocation9 + $0x20] sm:$0xff] %v840_v45 }
 0x149   :  { %v842_v47 = vpop.eup %841 }
 0x14a   :  { %612 = vst [vmem:[#allocation9 + $0x28] sm:$0xff] %v842_v47  ;;  %v288_v48 = vpack.c.bf16 %v842_v47, %v840_v45 }
 0x14c   :  { %v249_v49 = vpop.f32.mrb[16].mxu0  ;;  %778 = vmatmul.mubr.bf16.gmra.mrb[8].mxu1 %v288_v48 }
 0x14d   :  { %847 = vtanh.f32 %v249_v49  ;;  %v743_v50 = vpop.f32.mrb[17].mxu0  ;;  %781 = vmatprep.mubr.msk.bf16.mxu1 %vm1039_vm0, %v1038_v0 }
 0x14e   :  { %v252_v51 = vpop.f32.mrb[18].mxu0 }
 0x14f   :  { %v844_v52 = vpop.eup %843  ;;  %849 = vtanh.f32 %v252_v51  ;;  %v744_v53 = vpop.f32.mrb[19].mxu0 }
 0x150   :  { %613 = vst [vmem:[#allocation9 + $0x30] sm:$0xff] %v844_v52 }
 0x151   :  { %v846_v54 = vpop.eup %845 }
 0x152   :  { %614 = vst [vmem:[#allocation9 + $0x38] sm:$0xff] %v846_v54  ;;  %v289_v55 = vpack.c.bf16 %v846_v54, %v844_v52 }
 0x154   :  { %v257_v56 = vpop.f32.mrb[20].mxu0  ;;  %782 = vmatmul.mubr.bf16.gmra.mrb[12].mxu1 %v289_v55 }
 0x155   :  { %851 = vtanh.f32 %v257_v56  ;;  %v747_v57 = vpop.f32.mrb[21].mxu0  ;;  %785 = vmatprep.mubr.msk.bf16.mxu1 %vm1039_vm0, %v1038_v0 }
 0x156   :  { %v260_v58 = vpop.f32.mrb[22].mxu0 }
 0x157   :  { %v848_v59 = vpop.eup %847  ;;  %853 = vtanh.f32 %v260_v58  ;;  %v748_v60 = vpop.f32.mrb[23].mxu0 }
 0x158   :  { %615 = vst [vmem:[#allocation9 + $0x40] sm:$0xff] %v848_v59 }
 0x159   :  { %v850_v61 = vpop.eup %849 }
 0x15a   :  { %616 = vst [vmem:[#allocation9 + $0x48] sm:$0xff] %v850_v61  ;;  %v290_v62 = vpack.c.bf16 %v850_v61, %v848_v59 }
 0x15c   :  { %v265_v63 = vpop.f32.mrb[24].mxu0  ;;  %786 = vmatmul.mubr.bf16.gmra.mrb[16].mxu1 %v290_v62 }
 0x15d   :  { %855 = vtanh.f32 %v265_v63  ;;  %v751_v1 = vpop.f32.mrb[25].mxu0  ;;  %789 = vmatprep.mubr.msk.bf16.mxu1 %vm1039_vm0, %v1038_v0 }
 0x15e   :  { %v268_v2 = vpop.f32.mrb[26].mxu0 }
 0x15f   :  { %v852_v3 = vpop.eup %851  ;;  %857 = vtanh.f32 %v268_v2  ;;  %v752_v4 = vpop.f32.mrb[27].mxu0 }
 0x160   :  { %617 = vst [vmem:[#allocation9 + $0x50] sm:$0xff] %v852_v3 }
 0x161   :  { %v854_v5 = vpop.eup %853 }
 0x162   :  { %618 = vst [vmem:[#allocation9 + $0x58] sm:$0xff] %v854_v5  ;;  %v291_v6 = vpack.c.bf16 %v854_v5, %v852_v3 }
 0x164   :  { %790 = vmatmul.mubr.bf16.gmra.mrb[20].mxu1 %v291_v6 }
 0x165   :  { %793 = vmatprep.mubr.msk.bf16.mxu1 %vm1039_vm0, %v1038_v0 }
 0x167   :  { %v856_v7 = vpop.eup %855 }
 0x168   :  { %619 = vst [vmem:[#allocation9 + $0x60] sm:$0xff] %v856_v7 }
 0x169   :  { %v858_v8 = vpop.eup %857 }
 0x16a   :  { %620 = vst [vmem:[#allocation9 + $0x68] sm:$0xff] %v858_v8  ;;  %v292_v9 = vpack.c.bf16 %v858_v8, %v856_v7 }
 0x16c   :  { %794 = vmatmul.mubr.bf16.gmra.mrb[24].mxu1 %v292_v9 }
 0x20f   :  { %v398_v11 = vpop.f32.mrb[0].mxu1 }
 0x210   :  { %v399_v12 = vadd.f32 %v670_v10, %v398_v11  ;;  %v771_v13 = vpop.f32.mrb[1].mxu1 }
 0x211   :  { %v401_v14 = vpop.f32.mrb[2].mxu1 }
 0x212   :  { %453 = vmax.xlane.f32.xlu0 %v399_v12  ;;  %v772_v15 = vpop.f32.mrb[3].mxu1  ;;  %v402_v16 = vadd.f32 %v670_v10, %v401_v14 }
 0x216   :  { %455 = vmax.xlane.f32.xlu0 %v402_v16 }
 0x217   :  { %v406_v17 = vpop.f32.mrb[4].mxu1 }
 0x218   :  { %v407_v0 = vadd.f32 %v670_v10, %v406_v17  ;;  %v775_v18 = vpop.f32.mrb[5].mxu1 }
 0x219   :  { %v409_v19 = vpop.f32.mrb[6].mxu1 }
 0x21a   :  { %457 = vmax.xlane.f32.xlu1 %v407_v0  ;;  %v776_v20 = vpop.f32.mrb[7].mxu1  ;;  %v410_v21 = vadd.f32 %v670_v10, %v409_v19 }
 0x21e   :  { %459 = vmax.xlane.f32.xlu1 %v410_v21 }
 0x21f   :  { %v414_v22 = vpop.f32.mrb[8].mxu1 }
 0x220   :  { %v415_v23 = vadd.f32 %v670_v10, %v414_v22  ;;  %v779_v24 = vpop.f32.mrb[9].mxu1 }
 0x221   :  { %v417_v25 = vpop.f32.mrb[10].mxu1 }
 0x222   :  { %v418_v26 = vadd.f32 %v670_v10, %v417_v25  ;;  %461 = vmax.xlane.f32.xlu0 %v415_v23  ;;  %v780_v27 = vpop.f32.mrb[11].mxu1 }
 0x224   :  { %463 = vmax.xlane.f32.xlu1 %v418_v26 }
 0x227   :  { %v422_v28 = vpop.f32.mrb[12].mxu1 }
 0x228   :  { %v423_v29 = vadd.f32 %v670_v10, %v422_v28  ;;  %v783_v30 = vpop.f32.mrb[13].mxu1 }
 0x229   :  { %v425_v31 = vpop.f32.mrb[14].mxu1 }
 0x22a   :  { %v1173_v32 = vadd.f32 %v670_v10, %v425_v31  ;;  %465 = vmax.xlane.f32.xlu0 %v423_v29  ;;  %v784_v33 = vpop.f32.mrb[15].mxu1 }
 0x22c   :  { %467 = vmax.xlane.f32.xlu1 %v1173_v32 }
 0x22f   :  { %v430_v34 = vpop.f32.mrb[16].mxu1 }
 0x230   :  { %v1176_v35 = vadd.f32 %v670_v10, %v430_v34  ;;  %v787_v36 = vpop.f32.mrb[17].mxu1 }
 0x231   :  { %v433_v37 = vpop.f32.mrb[18].mxu1 }
 0x232   :  { %v1178_v38 = vadd.f32 %v670_v10, %v433_v37  ;;  %469 = vmax.xlane.f32.xlu0 %v1176_v35  ;;  %v788_v39 = vpop.f32.mrb[19].mxu1 }
 0x234   :  { %471 = vmax.xlane.f32.xlu1 %v1178_v38 }
 0x237   :  { %v438_v40 = vpop.f32.mrb[20].mxu1 }
 0x238   :  { %v1182_v41 = vadd.f32 %v670_v10, %v438_v40  ;;  %v791_v42 = vpop.f32.mrb[21].mxu1 }
 0x239   :  { %v441_v43 = vpop.f32.mrb[22].mxu1 }
 0x23a   :  { %v1184_v44 = vadd.f32 %v670_v10, %v441_v43  ;;  %473 = vmax.xlane.f32.xlu0 %v1182_v41  ;;  %v792_v45 = vpop.f32.mrb[23].mxu1 }
 0x23c   :  { %475 = vmax.xlane.f32.xlu1 %v1184_v44 }
 0x23f   :  { %v446_v46 = vpop.f32.mrb[24].mxu1 }
 0x240   :  { %v1188_v47 = vadd.f32 %v670_v10, %v446_v46  ;;  %v795_v48 = vpop.f32.mrb[25].mxu1 }
 0x241   :  { %v449_v49 = vpop.f32.mrb[26].mxu1 }
 0x242   :  { %v1190_v50 = vadd.f32 %v670_v10, %v449_v49  ;;  %477 = vmax.xlane.f32.xlu0 %v1188_v47  ;;  %v796_v51 = vpop.f32.mrb[27].mxu1 }
 0x244   :  { %479 = vmax.xlane.f32.xlu1 %v1190_v50 }
 0x29f   :  { %v454_v52 = vpop.xlane.xlu0 %453 }
 0x2a0   :  { %v1194_v53 = vsub.f32 %v399_v12, %v454_v52 }
 0x2a2   :  { %v495_v54 = vmul.f32 1.442695, %v1194_v53 }
 0x2a3   :  { %v456_v55 = vpop.xlane.xlu0 %455 }
 0x2a4   :  { %859 = vpow2.f32 %v495_v54  ;;  %v1197_v56 = vsub.f32 %v402_v16, %v456_v55 }
 0x2a6   :  { %v497_v57 = vmul.f32 1.442695, %v1197_v56 }
 0x2a7   :  { %v458_v58 = vpop.xlane.xlu1 %457 }
 0x2a8   :  { %861 = vpow2.f32 %v497_v57  ;;  %v1200_v59 = vsub.f32 %v407_v0, %v458_v58 }
 0x2aa   :  { %v499_v60 = vmul.f32 1.442695, %v1200_v59 }
 0x2ab   :  { %v460_v61 = vpop.xlane.xlu1 %459 }
 0x2ac   :  { %863 = vpow2.f32 %v499_v60  ;;  %v1203_v62 = vsub.f32 %v410_v21, %v460_v61 }
 0x2ae   :  { %v860_v63 = vpop.eup %859  ;;  %v501_v1 = vmul.f32 1.442695, %v1203_v62 }
 0x2af   :  { %v462_v2 = vpop.xlane.xlu0 %461  ;;  %523 = vadd.xlane.f32.xlu0 %v860_v63 }
 0x2b0   :  { %865 = vpow2.f32 %v501_v1  ;;  %v1206_v3 = vsub.f32 %v415_v23, %v462_v2 }
 0x2b1   :  { %v464_v4 = vpop.xlane.xlu1 %463 }
 0x2b2   :  { %v862_v5 = vpop.eup %861  ;;  %v503_v6 = vmul.f32 1.442695, %v1206_v3  ;;  %v1209_v7 = vsub.f32 %v418_v26, %v464_v4 }
 0x2b3   :  { %525 = vadd.xlane.f32.xlu1 %v862_v5 }
 0x2b4   :  { %867 = vpow2.f32 %v503_v6  ;;  %v505_v8 = vmul.f32 1.442695, %v1209_v7 }
 0x2b6   :  { %v864_v9 = vpop.eup %863  ;;  %869 = vpow2.f32 %v505_v8 }
 0x2b7   :  { %v466_v10 = vpop.xlane.xlu0 %465  ;;  %527 = vadd.xlane.f32.xlu0 %v864_v9 }
 0x2b8   :  { %v1212_v11 = vsub.f32 %v423_v29, %v466_v10 }
 0x2b9   :  { %v468_v12 = vpop.xlane.xlu1 %467 }
 0x2ba   :  { %v866_v13 = vpop.eup %865  ;;  %v507_v14 = vmul.f32 1.442695, %v1212_v11  ;;  %v1216_v15 = vsub.f32 %v1173_v32, %v468_v12 }
 0x2bb   :  { %529 = vadd.xlane.f32.xlu1 %v866_v13 }
 0x2bc   :  { %871 = vpow2.f32 %v507_v14  ;;  %v509_v16 = vmul.f32 1.442695, %v1216_v15 }
 0x2be   :  { %v868_v17 = vpop.eup %867  ;;  %873 = vpow2.f32 %v509_v16 }
 0x2bf   :  { %v470_v0 = vpop.xlane.xlu0 %469  ;;  %531 = vadd.xlane.f32.xlu0 %v868_v17 }
 0x2c0   :  { %v870_v18 = vpop.eup %869  ;;  %v1220_v19 = vsub.f32 %v1176_v35, %v470_v0 }
 0x2c1   :  { %v472_v20 = vpop.xlane.xlu1 %471  ;;  %533 = vadd.xlane.f32.xlu1 %v870_v18 }
 0x2c2   :  { %v511_v21 = vmul.f32 1.442695, %v1220_v19  ;;  %v1224_v22 = vsub.f32 %v1178_v38, %v472_v20 }
 0x2c4   :  { %875 = vpow2.f32 %v511_v21  ;;  %v513_v23 = vmul.f32 1.442695, %v1224_v22 }
 0x2c6   :  { %v872_v24 = vpop.eup %871  ;;  %877 = vpow2.f32 %v513_v23 }
 0x2c7   :  { %v474_v25 = vpop.xlane.xlu0 %473  ;;  %535 = vadd.xlane.f32.xlu0 %v872_v24 }
 0x2c8   :  { %v874_v26 = vpop.eup %873  ;;  %v1228_v27 = vsub.f32 %v1182_v41, %v474_v25 }
 0x2c9   :  { %v476_v28 = vpop.xlane.xlu1 %475  ;;  %537 = vadd.xlane.f32.xlu1 %v874_v26 }
 0x2ca   :  { %v515_v29 = vmul.f32 1.442695, %v1228_v27  ;;  %v1232_v30 = vsub.f32 %v1184_v44, %v476_v28 }
 0x2cc   :  { %879 = vpow2.f32 %v515_v29  ;;  %v517_v31 = vmul.f32 1.442695, %v1232_v30 }
 0x2ce   :  { %v876_v32 = vpop.eup %875  ;;  %881 = vpow2.f32 %v517_v31 }
 0x2cf   :  { %539 = vadd.xlane.f32.xlu0 %v876_v32  ;;  %v478_v33 = vpop.xlane.xlu0 %477 }
 0x2d0   :  { %v878_v34 = vpop.eup %877  ;;  %v1236_v35 = vsub.f32 %v1188_v47, %v478_v33 }
 0x2d1   :  { %541 = vadd.xlane.f32.xlu1 %v878_v34  ;;  %v480_v36 = vpop.xlane.xlu1 %479 }
 0x2d2   :  { %v519_v37 = vmul.f32 1.442695, %v1236_v35  ;;  %v1240_v38 = vsub.f32 %v1190_v50, %v480_v36 }
 0x2d4   :  { %883 = vpow2.f32 %v519_v37  ;;  %v521_v39 = vmul.f32 1.442695, %v1240_v38 }
 0x2d6   :  { %v880_v40 = vpop.eup %879  ;;  %885 = vpow2.f32 %v521_v39 }
 0x2d7   :  { %543 = vadd.xlane.f32.xlu0 %v880_v40 }
 0x2d8   :  { %v882_v41 = vpop.eup %881 }
 0x2d9   :  { %545 = vadd.xlane.f32.xlu1 %v882_v41 }
 0x2de   :  { %v884_v42 = vpop.eup %883 }
 0x2df   :  { %547 = vadd.xlane.f32.xlu0 %v884_v42 }
 0x2e0   :  { %v886_v43 = vpop.eup %885 }
 0x2e1   :  { %549 = vadd.xlane.f32.xlu1 %v886_v43 }
 0x2e2   :  { %992 = shalt.err (!%p989_p0)
}
 0x2e3   :  { %s993_s9 = scalar_lea.hbm %s1292_s5, 1792 }
 0x2e4   :  { %p994_p1 = scmp.ne.s32.totalorder %s1292_s5, %s993_s9  ;;  %p997_p2 = scmp.lt.u32.totalorder %s993_s9, %s1292_s5 }
 0x2e6   :  { %p999_p3 = pnand %p997_p2, %p994_p1 }
 0x2e8   :  { %1002 = shalt.err (!%p999_p3)
}
 0x2e9   :  { %s1041_s14 = smov 128   ;;  %s1042_s15 = smov 8  }
 0x2ea   :  { %644 = dma.vmem_to_hbm [thread:$0]  %s639_s30, 1792, %s1292_s5, [#allocation10], %s1041_s14, %s1041_s14, %s1042_s15  }
 0x2eb   :  { %s1043_s5 = smov [#allocation8]  }
 0x2ec   :  { %s626_s17 = sshll.u32 %s1043_s5, 4  ;;  %s627_s17 = int_to_ptr.vmem [resolvable:$true] %s626_s17 }
 0x2ed   :  { %s1003_s18 = scalar_lea.vmem %s627_s17, 1792  ;;  %p1008_p5 = scmp.lt.s32.totalorder %s627_s17, %s627_s17 }
 0x2ee   :  { %p1004_p4 = scmp.ne.s32.totalorder %s627_s17, %s1003_s18  ;;  %p1009_p6 = scmp.lt.s32.totalorder %s1003_s18, %s1003_s18 }
 0x2f0   :  { %p1010_p7 = por %p1009_p6, %p1008_p5 }
 0x2f2   :  { %p1011_p8 = pnand %p1010_p7, %p1004_p4 }
 0x33c   :  { %v524_v44 = vpop.xlane.xlu0 %523 }
 0x33d   :  { %887 = vlog2.f32 %v524_v44 }
 0x340   :  { %v526_v45 = vpop.xlane.xlu1 %525 }
 0x341   :  { %889 = vlog2.f32 %v526_v45 }
 0x344   :  { %v528_v46 = vpop.xlane.xlu0 %527 }
 0x345   :  { %891 = vlog2.f32 %v528_v46 }
 0x347   :  { %v888_v47 = vpop.eup %887 }
 0x348   :  { %v552_v48 = vmul.f32 0.6931472, %v888_v47  ;;  %v530_v49 = vpop.xlane.xlu1 %529 }
 0x349   :  { %893 = vlog2.f32 %v530_v49 }
 0x34a   :  { %v579_v50 = vsub.f32 %v1194_v53, %v552_v48 }
 0x34b   :  { %v890_v51 = vpop.eup %889 }
 0x34c   :  { %593 = vst [vmem:[#allocation8] sm:$0xff] %v579_v50  ;;  %v554_v52 = vmul.f32 0.6931472, %v890_v51  ;;  %v532_v54 = vpop.xlane.xlu0 %531 }
 0x34d   :  { %895 = vlog2.f32 %v532_v54 }
 0x34e   :  { %v580_v55 = vsub.f32 %v1197_v56, %v554_v52  ;;  %v534_v57 = vpop.xlane.xlu1 %533 }
 0x34f   :  { %v892_v58 = vpop.eup %891  ;;  %897 = vlog2.f32 %v534_v57 }
 0x350   :  { %594 = vst [vmem:[#allocation8 + $0x8] sm:$0xff] %v580_v55  ;;  %v556_v60 = vmul.f32 0.6931472, %v892_v58 }
 0x352   :  { %v581_v61 = vsub.f32 %v1200_v59, %v556_v60 }
 0x353   :  { %v894_v63 = vpop.eup %893 }
 0x354   :  { %595 = vst [vmem:[#allocation8 + $0x10] sm:$0xff] %v581_v61  ;;  %v558_v1 = vmul.f32 0.6931472, %v894_v63  ;;  %v536_v2 = vpop.xlane.xlu0 %535 }
 0x355   :  { %899 = vlog2.f32 %v536_v2 }
 0x356   :  { %v582_v53 = vsub.f32 %v1203_v62, %v558_v1  ;;  %v538_v4 = vpop.xlane.xlu1 %537 }
 0x357   :  { %v896_v5 = vpop.eup %895  ;;  %901 = vlog2.f32 %v538_v4 }
 0x358   :  { %596 = vst [vmem:[#allocation8 + $0x18] sm:$0xff] %v582_v53  ;;  %v560_v6 = vmul.f32 0.6931472, %v896_v5 }
 0x359   :  { %v898_v56 = vpop.eup %897 }
 0x35a   :  { %v583_v8 = vsub.f32 %v1206_v3, %v560_v6  ;;  %v562_v9 = vmul.f32 0.6931472, %v898_v56 }
 0x35c   :  { %597 = vst [vmem:[#allocation8 + $0x20] sm:$0xff] %v583_v8  ;;  %v584_v10 = vsub.f32 %v1209_v7, %v562_v9  ;;  %v540_v59 = vpop.xlane.xlu0 %539 }
 0x35d   :  { %903 = vlog2.f32 %v540_v59 }
 0x35e   :  { %598 = vst [vmem:[#allocation8 + $0x28] sm:$0xff] %v584_v10  ;;  %v542_v12 = vpop.xlane.xlu1 %541 }
 0x35f   :  { %v900_v13 = vpop.eup %899  ;;  %905 = vlog2.f32 %v542_v12 }
 0x360   :  { %v564_v14 = vmul.f32 0.6931472, %v900_v13 }
 0x361   :  { %v902_v62 = vpop.eup %901 }
 0x362   :  { %v585_v16 = vsub.f32 %v1212_v11, %v564_v14  ;;  %v566_v17 = vmul.f32 0.6931472, %v902_v62 }
 0x364   :  { %599 = vst [vmem:[#allocation8 + $0x30] sm:$0xff] %v585_v16  ;;  %v586_v0 = vsub.f32 %v1216_v15, %v566_v17  ;;  %v544_v18 = vpop.xlane.xlu0 %543 }
 0x365   :  { %907 = vlog2.f32 %v544_v18 }
 0x366   :  { %600 = vst [vmem:[#allocation8 + $0x38] sm:$0xff] %v586_v0  ;;  %v546_v3 = vpop.xlane.xlu1 %545 }
 0x367   :  { %v904_v20 = vpop.eup %903  ;;  %909 = vlog2.f32 %v546_v3 }
 0x368   :  { %v568_v7 = vmul.f32 0.6931472, %v904_v20 }
 0x369   :  { %v906_v21 = vpop.eup %905 }
 0x36a   :  { %v587_v23 = vsub.f32 %v1220_v19, %v568_v7  ;;  %v570_v24 = vmul.f32 0.6931472, %v906_v21 }
 0x36c   :  { %601 = vst [vmem:[#allocation8 + $0x40] sm:$0xff] %v587_v23  ;;  %v588_v25 = vsub.f32 %v1224_v22, %v570_v24  ;;  %v548_v26 = vpop.xlane.xlu0 %547 }
 0x36d   :  { %911 = vlog2.f32 %v548_v26 }
 0x36e   :  { %602 = vst [vmem:[#allocation8 + $0x48] sm:$0xff] %v588_v25  ;;  %v550_v11 = vpop.xlane.xlu1 %549 }
 0x36f   :  { %v908_v28 = vpop.eup %907  ;;  %913 = vlog2.f32 %v550_v11 }
 0x370   :  { %v572_v15 = vmul.f32 0.6931472, %v908_v28 }
 0x371   :  { %v910_v29 = vpop.eup %909 }
 0x372   :  { %v589_v31 = vsub.f32 %v1228_v27, %v572_v15  ;;  %v574_v32 = vmul.f32 0.6931472, %v910_v29 }
 0x374   :  { %603 = vst [vmem:[#allocation8 + $0x50] sm:$0xff] %v589_v31  ;;  %v590_v33 = vsub.f32 %v1232_v30, %v574_v32 }
 0x376   :  { %604 = vst [vmem:[#allocation8 + $0x58] sm:$0xff] %v590_v33 }
 0x377   :  { %v912_v19 = vpop.eup %911 }
 0x378   :  { %v576_v34 = vmul.f32 0.6931472, %v912_v19 }
 0x379   :  { %v914_v36 = vpop.eup %913 }
 0x37a   :  { %v591_v22 = vsub.f32 %v1236_v35, %v576_v34  ;;  %v578_v37 = vmul.f32 0.6931472, %v914_v36 }
 0x37c   :  { %605 = vst [vmem:[#allocation8 + $0x60] sm:$0xff] %v591_v22  ;;  %v592_v39 = vsub.f32 %v1240_v38, %v578_v37 }
 0x37e   :  { %606 = vst [vmem:[#allocation8 + $0x68] sm:$0xff] %v592_v39 }
 0x37f   :  { %1014 = shalt.err (!%p1011_p8)
}
 0x380   :  { %s1015_s22 = scalar_lea.hbm %s1291_s4, 1792 }
 0x381   :  { %p1016_p9 = scmp.ne.s32.totalorder %s1291_s4, %s1015_s22  ;;  %p1019_p10 = scmp.lt.u32.totalorder %s1015_s22, %s1291_s4 }
 0x383   :  { %p1021_p11 = pnand %p1019_p10, %p1016_p9 }
 0x385   :  { %1024 = shalt.err (!%p1021_p11)
}
 0x386   :  { %632 = dma.vmem_to_hbm [thread:$0]  %s627_s17, 1792, %s1291_s4, [#allocation4], %s1041_s14, %s1041_s14, %s1042_s15  }
 0x387   :  { %1029 = dma.done.wait [#allocation4], 1792  }
 0x388   :  { %1030 = vsyncadd [#allocation4], 4294965504 }
 0x389   :  { %1031 = dma.done.wait [#allocation10], 1792  }
 0x38a   :  { %1032 = vsyncadd [#allocation10], 4294965504 }
 0x38b   :  { %651 = vsyncpa [#allocation3], 1 }
 0x38c   :  { %652 = vsyncpa [#allocation6], 1 }
 0x38d   :  { %653 = vsyncpa [#allocation4], 1 }
 0x38e   :  { %654 = vsyncpa [#allocation10], 1 }

</bundles_post_ra>
